<compile_context>
chip_gen: v6e
topology: v6e:2x2x1
jax: 0.10.0
libtpu: 0.0.40
codegen_flags: <defaults>
</compile_context>

<pallas_src>
import jax
import jax.numpy as jnp
from jax import lax
from jax.experimental import pallas as pl
from jax.experimental.pallas import tpu as pltpu


def convolution_forward(x_nchw, w_oihw, gamma, beta, *, stride=1, eps=1e-5):
    """Forward of PyTorch `Convolution` (with_bn=True => conv bias=False, fresh
    BatchNorm2d in training mode normalizes with biased batch statistics)."""
    assert stride == 1  # TODO(synk): stride > 1 not implemented (module default is 1)
    N, Cin, H, W = x_nchw.shape
    Cout, Cin_w, k, k2 = w_oihw.shape
    assert Cin_w == Cin and k == k2 and k % 2 == 1  # 'same' pad only for odd k
    pad = (k - 1) // 2
    HW = H * W
    NHW = N * HW
    KC = k * k * Cin

    # ---- wrapper-side layout plumbing (im2col, batch collapsed onto lanes) ----
    # TODO(synk): for production sizes, move im2col in-kernel (halo'd row-strip DMA
    # + shifted pl.ds slices) instead of materializing the k*k-expanded tensor.
    xp = jnp.pad(x_nchw, ((0, 0), (0, 0), (pad, pad), (pad, pad)))
    taps = [xp[:, :, kh:kh + H, kw:kw + W] for kh in range(k) for kw in range(k)]
    # (k*k, N, Cin, H, W) -> (k*k, Cin, N, H, W) -> (KC, N*HW):
    #   row index  = tap * Cin + cin,   lane index = n * HW + h * W + w
    patches = (jnp.stack(taps, axis=0)
               .transpose(0, 2, 1, 3, 4)
               .reshape(KC, NHW)
               .astype(jnp.bfloat16))
    # OIHW -> (Cout, kh, kw, Cin) -> (Cout, KC), matching the (tap, cin) order above.
    w2 = jnp.transpose(w_oihw, (0, 2, 3, 1)).reshape(Cout, KC).astype(jnp.bfloat16)
    gamma2 = gamma.reshape(Cout, 1).astype(jnp.float32)
    beta2 = beta.reshape(Cout, 1).astype(jnp.float32)

    def fused_conv_bn_relu_kernel(p_ref, w_ref, g_ref, b_ref, out_ref):
        # Conv over the whole batch as a single MXU matmul (bf16 in, f32 acc).
        acc = jnp.dot(w_ref[...], p_ref[...],
                      preferred_element_type=jnp.float32)            # (Cout, N*HW)
        inv_count = 1.0 / float(NHW)
        mean = jnp.sum(acc, axis=1, keepdims=True) * inv_count        # (Cout, 1)
        centered = acc - mean                                         # two-pass var
        var = jnp.sum(centered * centered, axis=1, keepdims=True) * inv_count
        scale = g_ref[...] * lax.rsqrt(var + eps)                     # EUP rsqrt
        y = jnp.maximum(centered * scale + b_ref[...], 0.0)           # BN + ReLU on f32
        # Static, lane-aligned slices (HW % 128 == 0) back to (N, Cout, HW) layout.
        for n in range(N):
            out_ref[n] = y[:, n * HW:(n + 1) * HW].astype(out_ref.dtype)

    out = pl.pallas_call(
        fused_conv_bn_relu_kernel,
        grid=(1,),
        in_specs=[
            pl.BlockSpec((KC, NHW), lambda i: (0, 0)),
            pl.BlockSpec((Cout, KC), lambda i: (0, 0)),
            pl.BlockSpec((Cout, 1), lambda i: (0, 0)),
            pl.BlockSpec((Cout, 1), lambda i: (0, 0)),
        ],
        out_specs=pl.BlockSpec((N, Cout, HW), lambda i: (0, 0, 0)),
        # Final output kept f32 to match module dtype; switch to bf16 if the
        # consumer tolerates it (halves the only remaining HBM store traffic).
        out_shape=jax.ShapeDtypeStruct((N, Cout, HW), jnp.float32),
        compiler_params=pltpu.CompilerParams(
            dimension_semantics=("arbitrary",)),
    )(patches, w2, gamma2, beta2)

    return out.reshape(N, Cout, H, W)  # already NCHW order, no transpose


def _reference_forward(x_nchw, w_oihw, gamma, beta, eps=1e-5):
    """Pure-JAX f32 reference (lax conv + training-mode BN + ReLU)."""
    pad = (w_oihw.shape[-1] - 1) // 2
    conv = jax.lax.conv_general_dilated(
        x_nchw, w_oihw, window_strides=(1, 1),
        padding=((pad, pad), (pad, pad)),
        dimension_numbers=("NCHW", "OIHW", "NCHW"))
    mean = jnp.mean(conv, axis=(0, 2, 3), keepdims=True)
    var = jnp.var(conv, axis=(0, 2, 3), keepdims=True)
    bn = (conv - mean) / jnp.sqrt(var + eps) * gamma[None, :, None, None] \
         + beta[None, :, None, None]
    return jnp.maximum(bn, 0.0)


if __name__ == "__main__":
    # Module config: Convolution(k=3, inp_dim=4, out_dim=8, stride=1, with_bn=True)
    N, Cin, H, W = 2, 4, 16, 16
    Cout, k = 8, 3

    key = jax.random.PRNGKey(0)
    kx, kw, kg, kb = jax.random.split(key, 4)
    x = jax.random.normal(kx, (N, Cin, H, W), dtype=jnp.float32)
    # Conv2d weight (Cout, Cin, k, k); bias=False since with_bn=True
    w = jax.random.normal(kw, (Cout, Cin, k, k), dtype=jnp.float32) * 0.1
    # BatchNorm2d affine params (Cout,)
    gamma = 1.0 + 0.1 * jax.random.normal(kg, (Cout,), dtype=jnp.float32)
    beta = 0.1 * jax.random.normal(kb, (Cout,), dtype=jnp.float32)

    out = jax.block_until_ready(convolution_forward(x, w, gamma, beta))
    ref = jax.block_until_ready(_reference_forward(x, w, gamma, beta))

    assert out.shape == (N, Cout, H, W)
    max_err = float(jnp.max(jnp.abs(out - ref)))
    # Tolerance reflects bf16 matmul operands (f32 accumulation, BN applied to the
    # f32 accumulator); semantics otherwise match the PyTorch module.
    assert jnp.allclose(out, ref, rtol=4e-2, atol=4e-2), max_err

    print("KERNEL_OK")
</pallas_src>

<mosaic_0001>
module attributes {stable_mosaic.version = 11 : i64} {
  func.func @fused_conv_bn_relu_kernel(%arg0: i32, %arg1: memref<36x512xbf16, #tpu.memory_space<vmem>>, %arg2: memref<8x36xbf16, #tpu.memory_space<vmem>>, %arg3: memref<8x1xf32, #tpu.memory_space<vmem>>, %arg4: memref<8x1xf32, #tpu.memory_space<vmem>>, %arg5: memref<2x8x256xf32, #tpu.memory_space<vmem>>) attributes {dimension_semantics = [#tpu.dimension_semantics<arbitrary>], iteration_bounds = array<i64: 1>, scalar_prefetch = 0 : i64, scratch_operands = 0 : i64, tpu.core_type = #tpu.core_type<tc>, window_params = [{pipeline_mode = #tpu.pipeline_mode<synchronous>, transform_indices = @transform_0, window_bounds = array<i64: 36, 512>}, {pipeline_mode = #tpu.pipeline_mode<synchronous>, transform_indices = @transform_1, window_bounds = array<i64: 8, 36>}, {pipeline_mode = #tpu.pipeline_mode<synchronous>, transform_indices = @transform_2, window_bounds = array<i64: 8, 1>}, {pipeline_mode = #tpu.pipeline_mode<synchronous>, transform_indices = @transform_3, window_bounds = array<i64: 8, 1>}, {pipeline_mode = #tpu.pipeline_mode<synchronous>, transform_indices = @transform_4, window_bounds = array<i64: 2, 8, 256>}]} {
    %c0 = arith.constant 0 : index
    %c0_0 = arith.constant 0 : index
    %0 = vector.load %arg2[%c0, %c0_0] : memref<8x36xbf16, #tpu.memory_space<vmem>>, vector<8x36xbf16>
    %c0_1 = arith.constant 0 : index
    %c0_2 = arith.constant 0 : index
    %1 = vector.load %arg1[%c0_1, %c0_2] : memref<36x512xbf16, #tpu.memory_space<vmem>>, vector<36x512xbf16>
    %cst = arith.constant dense<0.000000e+00> : vector<8x512xf32>
    %2 = tpu.matmul %0, %1, %cst {dimension_numbers = #tpu.dot_dimension_numbers<[1], [0], [0], [1], [0, 0, 1, 1], [], []>} : vector<8x36xbf16>, vector<36x512xbf16>, vector<8x512xf32> -> vector<8x512xf32>
    %cst_3 = arith.constant dense<0.000000e+00> : vector<8xf32>
    %3 = vector.multi_reduction <add>, %2, %cst_3 [1] : vector<8x512xf32> to vector<8xf32>
    %4 = vector.shape_cast %3 : vector<8xf32> to vector<8x1xf32>
    %cst_4 = arith.constant 0.001953125 : f32
    %5 = vector.broadcast %cst_4 : f32 to vector<8x1xf32>
    %6 = arith.mulf %4, %5 : vector<8x1xf32>
    %7 = vector.broadcast %6 : vector<8x1xf32> to vector<8x512xf32>
    %8 = arith.subf %2, %7 : vector<8x512xf32>
    %9 = arith.mulf %8, %8 : vector<8x512xf32>
    %cst_5 = arith.constant dense<0.000000e+00> : vector<8xf32>
    %10 = vector.multi_reduction <add>, %9, %cst_5 [1] : vector<8x512xf32> to vector<8xf32>
    %11 = vector.shape_cast %10 : vector<8xf32> to vector<8x1xf32>
    %cst_6 = arith.constant 0.001953125 : f32
    %12 = vector.broadcast %cst_6 : f32 to vector<8x1xf32>
    %13 = arith.mulf %11, %12 : vector<8x1xf32>
    %c0_7 = arith.constant 0 : index
    %c0_8 = arith.constant 0 : index
    %14 = vector.load %arg3[%c0_7, %c0_8] : memref<8x1xf32, #tpu.memory_space<vmem>>, vector<8x1xf32>
    %cst_9 = arith.constant 9.99999974E-6 : f32
    %15 = vector.broadcast %cst_9 : f32 to vector<8x1xf32>
    %16 = arith.addf %13, %15 : vector<8x1xf32>
    %17 = math.rsqrt %16 : vector<8x1xf32>
    %18 = arith.mulf %14, %17 : vector<8x1xf32>
    %19 = vector.broadcast %18 : vector<8x1xf32> to vector<8x512xf32>
    %20 = arith.mulf %8, %19 : vector<8x512xf32>
    %c0_10 = arith.constant 0 : index
    %c0_11 = arith.constant 0 : index
    %21 = vector.load %arg4[%c0_10, %c0_11] : memref<8x1xf32, #tpu.memory_space<vmem>>, vector<8x1xf32>
    %22 = vector.broadcast %21 : vector<8x1xf32> to vector<8x512xf32>
    %23 = arith.addf %20, %22 : vector<8x512xf32>
    %cst_12 = arith.constant 0.000000e+00 : f32
    %24 = vector.broadcast %cst_12 : f32 to vector<8x512xf32>
    %25 = arith.maximumf %23, %24 : vector<8x512xf32>
    %26 = vector.extract_strided_slice %25 {offsets = [0, 0], sizes = [8, 256], strides = [1, 1]} : vector<8x512xf32> to vector<8x256xf32>
    %c0_13 = arith.constant 0 : index
    %c0_14 = arith.constant 0 : index
    %c0_15 = arith.constant 0 : index
    %27 = vector.load %arg5[%c0_13, %c0_14, %c0_15] : memref<2x8x256xf32, #tpu.memory_space<vmem>>, vector<1x8x256xf32>
    %28 = vector.shape_cast %27 : vector<1x8x256xf32> to vector<8x256xf32>
    %29 = vector.shape_cast %26 : vector<8x256xf32> to vector<1x8x256xf32>
    tpu.vector_store %arg5[%c0_13, %c0_14, %c0_15], %29 {strides = array<i32>} : memref<2x8x256xf32, #tpu.memory_space<vmem>>, vector<1x8x256xf32>,
    %30 = vector.extract_strided_slice %25 {offsets = [0, 256], sizes = [8, 256], strides = [1, 1]} : vector<8x512xf32> to vector<8x256xf32>
    %c1 = arith.constant 1 : index
    %c0_16 = arith.constant 0 : index
    %c0_17 = arith.constant 0 : index
    %31 = vector.load %arg5[%c1, %c0_16, %c0_17] : memref<2x8x256xf32, #tpu.memory_space<vmem>>, vector<1x8x256xf32>
    %32 = vector.shape_cast %31 : vector<1x8x256xf32> to vector<8x256xf32>
    %33 = vector.shape_cast %30 : vector<8x256xf32> to vector<1x8x256xf32>
    tpu.vector_store %arg5[%c1, %c0_16, %c0_17], %33 {strides = array<i32>} : memref<2x8x256xf32, #tpu.memory_space<vmem>>, vector<1x8x256xf32>,
    return
  }
  func.func @transform_0(%arg0: i32) -> (i32, i32) {
    %c0_i32 = arith.constant 0 : i32
    %c0_i32_0 = arith.constant 0 : i32
    %c0_i32_1 = arith.constant 0 : i32
    return %c0_i32, %c0_i32_0 : i32, i32
  }
  func.func @transform_1(%arg0: i32) -> (i32, i32) {
    %c0_i32 = arith.constant 0 : i32
    %c0_i32_0 = arith.constant 0 : i32
    %c0_i32_1 = arith.constant 0 : i32
    return %c0_i32, %c0_i32_0 : i32, i32
  }
  func.func @transform_2(%arg0: i32) -> (i32, i32) {
    %c0_i32 = arith.constant 0 : i32
    %c0_i32_0 = arith.constant 0 : i32
    %c0_i32_1 = arith.constant 0 : i32
    return %c0_i32, %c0_i32_0 : i32, i32
  }
  func.func @transform_3(%arg0: i32) -> (i32, i32) {
    %c0_i32 = arith.constant 0 : i32
    %c0_i32_0 = arith.constant 0 : i32
    %c0_i32_1 = arith.constant 0 : i32
    return %c0_i32, %c0_i32_0 : i32, i32
  }
  func.func @transform_4(%arg0: i32) -> (i32, i32, i32) {
    %c0_i32 = arith.constant 0 : i32
    %c0_i32_0 = arith.constant 0 : i32
    %c0_i32_1 = arith.constant 0 : i32
    %c0_i32_2 = arith.constant 0 : i32
    return %c0_i32, %c0_i32_0, %c0_i32_1 : i32, i32, i32
  }
}

</mosaic_0001>

<bundles_post_ra>
// kernel: tpu_custom_call.1
= control target key start
LH: loop header
LB: loop body
LE: loop exit
PB: predicated region body
PF: predicated region fallthrough
CT: control target
= control target key end

     0   :  { %9 = vsyncpa [#allocation3], 0  ;;  %s398_s0 = inlined_call_operand.hbm [shape: bf16[36,512], index: 0, kind: input, shape index: {}]   ;;  %s399_s1 = inlined_call_operand.vmem [shape: bf16[8,36], index: 1, kind: input, shape index: {}]   ;;  %s400_s2 = inlined_call_operand.vmem [shape: f32[8,1], index: 2, kind: input, shape index: {}]   ;;  %s401_s3 = inlined_call_operand.vmem [shape: f32[8,1], index: 3, kind: input, shape index: {}]   ;;  %s402_s4 = inlined_call_operand.hbm [shape: f32[2,8,256], index: 4, kind: output, shape index: {}]  }
   0x1   :  { %10 = vsyncpa [#allocation4], 0  ;;  %s347_s15 = smov [#allocation2]  }
   0x2   :  { %s16_s16 = sshll.u32 %s347_s15, 4  ;;  %s17_s16 = int_to_ptr.vmem [resolvable:$true] %s16_s16 }
   0x3   :  { %s311_s17 = scalar_lea.vmem %s17_s16, 1280  ;;  %p316_p1 = scmp.lt.s32.totalorder %s17_s16, %s17_s16 }
   0x4   :  { %p312_p0 = scmp.ne.s32.totalorder %s17_s16, %s311_s17  ;;  %p317_p2 = scmp.lt.s32.totalorder %s311_s17, %s311_s17 }
   0x6   :  { %p318_p3 = por %p317_p2, %p316_p1 }
   0x8   :  { %p319_p4 = pnand %p318_p3, %p312_p0 }
   0xa   :  { %322 = shalt.err (!%p319_p4)
}
   0xb   :  { %s348_s18 = smov 256   ;;  %s349_s19 = smov 16  }
   0xc   :  { %22 = dma.hbm_to_vmem [thread:$0]  %s398_s0, 1280, %s17_s16, [#allocation3], %s348_s18, %s348_s18, %s349_s19  }
   0xd   :  { %343 = dma.done.wait [#allocation3], 1280  }
   0xe   :  { %344 = vsyncadd [#allocation3], 4294966016  ;;  %v350_v0 = vmov 0   ;;  %v42_v1 = vld [vmem:[#allocation2 + $0x40] sm:$0x33]  ;;  %vm98_vm0 = vcmask 1041408  }
   0xf   :  { %143 = vmatprep.mubr.bf16.mxu0 %v350_v0  ;;  %184 = vmatprep.mubr.bf16.mxu1 %v350_v0  ;;  %v43_v2 = vld [vmem:[#allocation2 + $0x48] sm:$0x33]  ;;  %v271_v3 = vcombine.high %v42_v1, %v42_v1  ;;  %v270_v5 = vcombine.low %v42_v1, %v42_v1  ;;  %v289_v7 = vld [vmem:[#allocation2 + $0x24] ss:$16 sps:$4 sm:$0xff]   ;;  %v293_v11 = vld [vmem:[#allocation2 + $0x20] ss:$16 sps:$4 sm:$0xff]  }
  0x10   :  { %283 = vset.pattern.permute.xlu1 %v350_v0  ;;  %284 = vset.pattern.permute.xlu0 %v350_v0  ;;  %v273_v4 = vcombine.high %v43_v2, %v43_v2  ;;  %v272_v6 = vcombine.low %v43_v2, %v43_v2  ;;  %v291_v8 = vld [vmem:[#allocation2 + $0x2c] ss:$16 sps:$4 sm:$0xff]   ;;  %v294_v12 = vld [vmem:[#allocation2 + $0x28] ss:$16 sps:$4 sm:$0xff]   ;;  %v295_v13 = vld [vmem:[#allocation2 + $0x4] ss:$16 sps:$4 sm:$0xff]  }
  0x11   :  { %274 = vmatprep.subr.msk.bf16.mxu0 %vm98_vm0, %v271_v3  ;;  %v100_v9 = vsel %vm98_vm0, %v270_v5, 0  ;;  %v297_v14 = vld [vmem:[#allocation2 + $0xc] ss:$16 sps:$4 sm:$0xff]   ;;  %v299_v15 = vld [vmem:[#allocation2] ss:$16 sps:$4 sm:$0xff]   ;;  %vm94_vm1 = vcmask 293888  }
  0x12   :  { %276 = vmatprep.subr.msk.bf16.mxu1 %vm98_vm0, %v273_v4  ;;  %v106_v10 = vsel %vm98_vm0, %v272_v6, 0  ;;  %122 = vmatpush1.bf16.msra.mxu0 %v100_v9  ;;  %v300_v16 = vld [vmem:[#allocation2 + $0x8] ss:$16 sps:$4 sm:$0xff]   ;;  %v33_v17 = vld [vmem:[%s399_s1] sm:$0xf]  ;;  %s351_s26 = smov [#allocation5]  }
  0x13   :  { %163 = vmatpush1.bf16.msra.mxu1 %v106_v10  ;;  %123 = vmatprep.subr.bf16.mxu0 %v289_v7  ;;  %v213_v45 = vld [vmem:[%s400_s2] sm:$0xff]  ;;  %s250_s27 = sshll.u32 %s351_s26, 4  ;;  %s251_s27 = int_to_ptr.vmem [resolvable:$true] %s250_s27 }
  0x14   :  { %164 = vmatprep.subr.bf16.mxu1 %v291_v8  ;;  %v226_v48 = vld [vmem:[%s401_s3] sm:$0xff]  ;;  %s323_s2 = scalar_lea.vmem %s251_s27, 512  ;;  %p328_p6 = scmp.lt.s32.totalorder %s251_s27, %s251_s27 }
  0x15   :  { %p324_p5 = scmp.ne.s32.totalorder %s251_s27, %s323_s2  ;;  %p329_p7 = scmp.lt.s32.totalorder %s323_s2, %s323_s2 }
  0x16   :  { %124 = vmatpush1.bf16.msra.mxu0 %v293_v11 }
  0x17   :  { %165 = vmatpush1.bf16.msra.mxu1 %v294_v12  ;;  %125 = vmatprep.subr.bf16.mxu0 %v295_v13  ;;  %p330_p8 = por %p329_p7, %p328_p6 }
  0x18   :  { %166 = vmatprep.subr.bf16.mxu1 %v297_v14 }
  0x19   :  { %p331_p9 = pnand %p330_p8, %p324_p5 }
  0x1a   :  { %126 = vmatpush1.bf16.msra.mxu0 %v299_v15 }
  0x1b   :  { %167 = vmatpush1.bf16.msra.mxu1 %v300_v16 }
  0x1d   :  { %275 = vmatmul.mubr.msk.bf16.vlgmr.msra.gmra.mxu0 %vm94_vm1, %v33_v17 }
  0x1e   :  { %277 = vmatmul.mubr.msk.bf16.vlgmr.msra.gmra.mxu1 %vm94_vm1, %v33_v17 }
  0xdd   :  { %v145_v18 = vpop.f32.mrf.mxu0 }
  0xde   :  { %v186_v19 = vpop.f32.mrf.mxu1 }
  0xdf   :  { %v147_v20 = vpop.f32.mrf.mxu0 }
  0xe0   :  { %v188_v21 = vpop.f32.mrf.mxu1  ;;  %v193_v22 = vadd.f32 %v147_v20, %v145_v18 }
  0xe1   :  { %v149_v23 = vpop.f32.mrf.mxu0 }
  0xe2   :  { %v190_v24 = vpop.f32.mrf.mxu1  ;;  %v194_v25 = vadd.f32 %v193_v22, %v186_v19 }
  0xe3   :  { %v150_v26 = vpop.f32.mrf.mxu0 }
  0xe4   :  { %v191_v27 = vpop.f32.mrf.mxu1  ;;  %v195_v28 = vadd.f32 %v194_v25, %v188_v21 }
  0xe6   :  { %196 = vadd.xlane.f32.xlu0 %v195_v28 }
 0x16f   :  { %v197_v29 = vpop.xlane.xlu0 %196 }
 0x170   :  { %v198_v30 = vmul.f32 0.001953125, %v197_v29 }
 0x172   :  { %v199_v31 = vsub.f32 %v145_v18, %v198_v30  ;;  %v200_v32 = vsub.f32 %v147_v20, %v198_v30  ;;  %v201_v33 = vsub.f32 %v186_v19, %v198_v30  ;;  %v202_v34 = vsub.f32 %v188_v21, %v198_v30 }
 0x174   :  { %v203_v35 = vmul.f32 %v199_v31, %v199_v31  ;;  %v204_v36 = vmul.f32 %v200_v32, %v200_v32  ;;  %v205_v37 = vmul.f32 %v201_v33, %v201_v33  ;;  %v206_v39 = vmul.f32 %v202_v34, %v202_v34 }
 0x176   :  { %v207_v38 = vadd.f32 %v204_v36, %v203_v35 }
 0x178   :  { %v208_v40 = vadd.f32 %v207_v38, %v205_v37 }
 0x17a   :  { %v209_v41 = vadd.f32 %v208_v40, %v206_v39 }
 0x17c   :  { %210 = vadd.xlane.f32.xlu0 %v209_v41 }
 0x205   :  { %v211_v42 = vpop.xlane.xlu0 %210 }
 0x206   :  { %v212_v43 = vmul.f32 0.001953125, %v211_v42 }
 0x208   :  { %v214_v44 = vadd.f32 1e-05, %v212_v43 }
 0x20a   :  { %301 = vrsqrt.f32 %v214_v44 }
 0x217   :  { %v302_v46 = vpop.eup %301 }
 0x218   :  { %v216_v47 = vmul.f32 %v302_v46, %v213_v45 }
 0x21a   :  { %219 = vperm.xlu1 %283, %v216_v47  }
 0x21e   :  { %229 = vperm.xlu1 %283, %v226_v48  }
 0x295   :  { %v220_v49 = vpop.permute.xlu1 %219 }
 0x296   :  { %v222_v50 = vmul.f32 %v220_v49, %v199_v31  ;;  %v223_v51 = vmul.f32 %v220_v49, %v200_v32  ;;  %v224_v52 = vmul.f32 %v220_v49, %v201_v33  ;;  %v225_v53 = vmul.f32 %v220_v49, %v202_v34 }
 0x299   :  { %v230_v54 = vpop.permute.xlu1 %229 }
 0x29a   :  { %v232_v55 = vadd.f32 %v230_v54, %v222_v50  ;;  %v233_v56 = vadd.f32 %v230_v54, %v223_v51  ;;  %v234_v57 = vadd.f32 %v230_v54, %v224_v52  ;;  %v235_v58 = vadd.f32 %v230_v54, %v225_v53 }
 0x29c   :  { %v236_v59 = vmax.f32 %v232_v55, 0.0  ;;  %v237_v60 = vmax.f32 %v233_v56, 0.0  ;;  %v238_v61 = vmax.f32 %v234_v57, 0.0  ;;  %v239_v62 = vmax.f32 %v235_v58, 0.0 }
 0x29e   :  { %240 = vst [vmem:[#allocation5] sm:$0xff] %v236_v59  ;;  %241 = vst [vmem:[#allocation5 + $0x8] sm:$0xff] %v237_v60 }
 0x29f   :  { %243 = vst [vmem:[#allocation5 + $0x10] sm:$0xff] %v238_v61  ;;  %244 = vst [vmem:[#allocation5 + $0x18] sm:$0xff] %v239_v62 }
 0x2a0   :  { %334 = shalt.err (!%p331_p9)
}
 0x2a1   :  { %256 = dma.vmem_to_hbm [thread:$0]  %s251_s27, 512, %s402_s4, [#allocation4], %s348_s18, %s348_s18, %s349_s19  }
 0x2a2   :  { %345 = dma.done.wait [#allocation4], 512  }
 0x2a3   :  { %346 = vsyncadd [#allocation4], 4294966784 }
 0x2a4   :  { %260 = vsyncpa [#allocation3], 1 }
 0x2a5   :  { %261 = vsyncpa [#allocation4], 1 }

</bundles_post_ra>
